<compile_context>
chip_gen: v6e
topology: v6e:2x2x1
jax: 0.10.0
libtpu: 0.0.40
codegen_flags: <defaults>
</compile_context>

<pallas_src>
import jax
import jax.numpy as jnp
from jax.experimental import pallas as pl
from jax.experimental.pallas import tpu as pltpu


def encoder_rnn_kernel(
    tok_ref,      # SMEM scalar-prefetch: (T,) int32 token ids
    emb_ref,      # (V, H)   full embedding table (resident)
    h0_ref,       # (1, H)   initial hidden state
    w_gru_ref,    # (H, 6H)  [W_ih^T | W_hh^T]   (r|z|n gate order inside each half)
    b_gru_ref,    # (1, 6H)  [b_ih   | b_hh]
    w_head_ref,   # (H, 2L)  [W_mu^T | W_logvar^T]
    b_head_ref,   # (1, 2L)  [b_mu   | b_logvar]
    out_ref,      # (1, 1, H+2L)  per-step slab: h_new | mu | logvar
    h_scr,        # VMEM (1, H) hidden-state accumulator (persists across grid steps)
):
    H = h0_ref.shape[1]
    L2 = b_head_ref.shape[1]
    t = pl.program_id(0)

    # Load the initial hidden state once; it then lives in VMEM scratch.
    @pl.when(t == 0)
    def _():
        h_scr[...] = h0_ref[...]

    tok = tok_ref[t]
    x = emb_ref[pl.ds(tok, 1), :]          # (1, H) embedding row gather in-kernel
    h = h_scr[...]                         # (1, H)

    # Fused GRU matmul: one MXU push for both gi and gh.
    lhs = jnp.concatenate([x, h], axis=0)                                  # (2, H)
    g = jnp.dot(lhs, w_gru_ref[...], preferred_element_type=jnp.float32)  # (2, 6H)
    g = g + b_gru_ref[...]                 # row 0 gets b_ih on [0:3H], row 1 gets b_hh on [3H:6H]
    gi = g[0:1, 0:3 * H]                   # x @ W_ih^T + b_ih
    gh = g[1:2, 3 * H:6 * H]               # h @ W_hh^T + b_hh

    # PyTorch GRU gate order: r, z, n
    r = jax.nn.sigmoid(gi[:, 0:H] + gh[:, 0:H])
    z = jax.nn.sigmoid(gi[:, H:2 * H] + gh[:, H:2 * H])
    n = jnp.tanh(gi[:, 2 * H:3 * H] + r * gh[:, 2 * H:3 * H])
    h_new = (1.0 - z) * n + z * h

    h_scr[...] = h_new                     # carry hidden to the next grid step

    # Fused mu|logvar head: one matmul, one bias add.
    heads = (
        jnp.dot(h_new, w_head_ref[...], preferred_element_type=jnp.float32)
        + b_head_ref[...]
    )                                                                      # (1, 2L)

    # Single lane-contiguous output slab per step.
    out_ref[...] = jnp.concatenate([h_new, heads], axis=1).reshape(1, 1, H + L2)


def _run_encoder_kernel(params, tokens, hidden0):
    """tokens: (T,) int32; hidden0: (1,1,H). Returns slab (T, H + 2L) float32."""
    H = params["w_hh"].shape[1]
    L = params["w_mu"].shape[0]
    V = params["emb"].shape[0]
    T = tokens.shape[0]

    emb = params["emb"].astype(jnp.float32)                                  # (V, H)
    h0 = hidden0.reshape(1, H).astype(jnp.float32)                           # (1, H)
    w_gru = jnp.concatenate(
        [params["w_ih"].T, params["w_hh"].T], axis=1).astype(jnp.float32)    # (H, 6H)
    b_gru = jnp.concatenate(
        [params["b_ih"], params["b_hh"]]).reshape(1, 6 * H).astype(jnp.float32)
    w_head = jnp.concatenate(
        [params["w_mu"].T, params["w_lv"].T], axis=1).astype(jnp.float32)    # (H, 2L)
    b_head = jnp.concatenate(
        [params["b_mu"], params["b_lv"]]).reshape(1, 2 * L).astype(jnp.float32)

    def full(shape):
        # Whole-array block, constant index_map -> DMA'd once, resident across steps.
        return pl.BlockSpec(shape, lambda t, tok: (0,) * len(shape))

    grid_spec = pltpu.PrefetchScalarGridSpec(
        num_scalar_prefetch=1,
        grid=(T,),
        in_specs=[
            full((V, H)),
            full((1, H)),
            full((H, 6 * H)),
            full((1, 6 * H)),
            full((H, 2 * L)),
            full((1, 2 * L)),
        ],
        out_specs=pl.BlockSpec((1, 1, H + 2 * L), lambda t, tok: (t, 0, 0)),
        scratch_shapes=[pltpu.VMEM((1, H), jnp.float32)],
    )

    slab = pl.pallas_call(
        encoder_rnn_kernel,
        out_shape=jax.ShapeDtypeStruct((T, 1, H + 2 * L), jnp.float32),
        grid_spec=grid_spec,
        compiler_params=pltpu.CompilerParams(
            dimension_semantics=("arbitrary",)),   # sequential carry through hidden
    )(tokens.astype(jnp.int32), emb, h0, w_gru, b_gru, w_head, b_head)

    return slab.reshape(T, H + 2 * L), H, L


def encoder_rnn_forward(params, x_token, hidden):
    """Single step, matching EncoderRNN.forward.
    x_token: int32 (1,), hidden: float32 (1,1,H).
    Returns (output, hidden, mu, logvar) with PyTorch shapes (1,1,H),(1,1,H),(1,1,L),(1,1,L)."""
    slab, H, L = _run_encoder_kernel(params, x_token.reshape(1), hidden)
    h_new = slab[0, :H].reshape(1, 1, H)
    mu = slab[0, H:H + L].reshape(1, 1, L)
    logvar = slab[0, H + L:].reshape(1, 1, L)
    # output == hidden for a 1-layer, 1-step GRU; duplicate in the wrapper (not the kernel).
    return h_new, h_new, mu, logvar


def encoder_rnn_forward_seq(params, tokens, hidden0):
    """Whole token sequence in ONE pallas_call (semantics == calling forward() per token).
    Returns (outputs (T,H), final hidden (1,1,H), mus (T,L), logvars (T,L))."""
    slab, H, L = _run_encoder_kernel(params, tokens, hidden0)
    outputs = slab[:, :H]
    hidden_T = slab[-1, :H].reshape(1, 1, H)
    mus = slab[:, H:H + L]
    logvars = slab[:, H + L:]
    return outputs, hidden_T, mus, logvars


def reference_forward(params, x_token, hidden):
    """Pure-JAX reference matching torch.nn.GRU / Linear semantics (single step)."""
    H = params["w_hh"].shape[1]
    x = params["emb"][x_token[0]].reshape(1, H)
    h = hidden.reshape(1, H)
    gi = x @ params["w_ih"].T + params["b_ih"]
    gh = h @ params["w_hh"].T + params["b_hh"]
    r = jax.nn.sigmoid(gi[:, :H] + gh[:, :H])
    z = jax.nn.sigmoid(gi[:, H:2 * H] + gh[:, H:2 * H])
    n = jnp.tanh(gi[:, 2 * H:] + r * gh[:, 2 * H:])
    h_new = (1.0 - z) * n + z * h
    mu = h_new @ params["w_mu"].T + params["b_mu"]
    lv = h_new @ params["w_lv"].T + params["b_lv"]
    return h_new, h_new, mu, lv


if __name__ == "__main__":
    V, H, L = 20, 32, 16          # input_size (vocab), hidden_size, latent_size
    key = jax.random.PRNGKey(0)
    ks = jax.random.split(key, 11)
    s = float(1.0 / (H ** 0.5))

    params = {
        "emb":  jax.random.normal(ks[0], (V, H), jnp.float32),
        "w_ih": jax.random.uniform(ks[1], (3 * H, H), jnp.float32, -s, s),
        "w_hh": jax.random.uniform(ks[2], (3 * H, H), jnp.float32, -s, s),
        "b_ih": jax.random.uniform(ks[3], (3 * H,), jnp.float32, -s, s),
        "b_hh": jax.random.uniform(ks[4], (3 * H,), jnp.float32, -s, s),
        "w_mu": jax.random.uniform(ks[5], (L, H), jnp.float32, -s, s),
        "b_mu": jax.random.uniform(ks[6], (L,), jnp.float32, -s, s),
        "w_lv": jax.random.uniform(ks[7], (L, H), jnp.float32, -s, s),
        "b_lv": jax.random.uniform(ks[8], (L,), jnp.float32, -s, s),
    }

    # initHidden: zeros(1,1,H-c) concat c along last axis
    c = jax.random.normal(ks[9], (1, 1, 8), jnp.float32)
    hidden0 = jnp.concatenate([jnp.zeros((1, 1, H - 8), jnp.float32), c], axis=2)

    # ---- single-step forward (exact EncoderRNN.forward semantics) ----
    x_token = jnp.array([3], dtype=jnp.int32)
    out, hid, mu, logvar = encoder_rnn_forward(params, x_token, hidden0)
    jax.block_until_ready((out, hid, mu, logvar))

    r_out, r_hid, r_mu, r_lv = reference_forward(params, x_token, hidden0)
    assert jnp.allclose(out.reshape(1, H), r_out, atol=1e-4, rtol=1e-4)
    assert jnp.allclose(hid.reshape(1, H), r_hid, atol=1e-4, rtol=1e-4)
    assert jnp.allclose(mu.reshape(1, L), r_mu, atol=1e-4, rtol=1e-4)
    assert jnp.allclose(logvar.reshape(1, L), r_lv, atol=1e-4, rtol=1e-4)

    # ---- whole sequence fused into one pallas_call (amortized launch / weight DMA) ----
    T = 6
    tokens = jax.random.randint(ks[10], (T,), 0, V, dtype=jnp.int32)
    outs, hid_T, mus, lvs = encoder_rnn_forward_seq(params, tokens, hidden0)
    jax.block_until_ready((outs, hid_T, mus, lvs))

    h_ref = hidden0
    for i in range(T):
        ro, rh, rm, rl = reference_forward(params, tokens[i:i + 1], h_ref)
        h_ref = rh
        assert jnp.allclose(outs[i], ro.reshape(H), atol=2e-4, rtol=2e-4)
        assert jnp.allclose(mus[i], rm.reshape(L), atol=2e-4, rtol=2e-4)
        assert jnp.allclose(lvs[i], rl.reshape(L), atol=2e-4, rtol=2e-4)
    assert jnp.allclose(hid_T.reshape(1, H), h_ref, atol=2e-4, rtol=2e-4)

    print("KERNEL_OK")
</pallas_src>

<mosaic_0001>
module attributes {stable_mosaic.version = 11 : i64} {
  func.func @encoder_rnn_kernel(%arg0: i32, %arg1: memref<1xi32, #tpu.memory_space<smem>>, %arg2: memref<20x32xf32, #tpu.memory_space<vmem>>, %arg3: memref<1x32xf32, #tpu.memory_space<vmem>>, %arg4: memref<32x192xf32, #tpu.memory_space<vmem>>, %arg5: memref<1x192xf32, #tpu.memory_space<vmem>>, %arg6: memref<32x32xf32, #tpu.memory_space<vmem>>, %arg7: memref<1x32xf32, #tpu.memory_space<vmem>>, %arg8: memref<1x1x64xf32, #tpu.memory_space<vmem>>, %arg9: memref<1x32xf32, #tpu.memory_space<vmem>>) attributes {dimension_semantics = [#tpu.dimension_semantics<arbitrary>], iteration_bounds = array<i64: 1>, scalar_prefetch = 1 : i64, scratch_operands = 1 : i64, tpu.core_type = #tpu.core_type<tc>, window_params = [{pipeline_mode = #tpu.pipeline_mode<synchronous>, transform_indices = @transform_0, window_bounds = array<i64: 20, 32>}, {pipeline_mode = #tpu.pipeline_mode<synchronous>, transform_indices = @transform_1, window_bounds = array<i64: 1, 32>}, {pipeline_mode = #tpu.pipeline_mode<synchronous>, transform_indices = @transform_2, window_bounds = array<i64: 32, 192>}, {pipeline_mode = #tpu.pipeline_mode<synchronous>, transform_indices = @transform_3, window_bounds = array<i64: 1, 192>}, {pipeline_mode = #tpu.pipeline_mode<synchronous>, transform_indices = @transform_4, window_bounds = array<i64: 32, 32>}, {pipeline_mode = #tpu.pipeline_mode<synchronous>, transform_indices = @transform_5, window_bounds = array<i64: 1, 32>}, {transform_indices = @transform_6, window_bounds = array<i64: 1, 1, 64>}]} {
    %c0_i32 = arith.constant 0 : i32
    %0 = arith.cmpi eq, %arg0, %c0_i32 : i32
    %1 = arith.extui %0 : i1 to i32
    %c0_i32_0 = arith.constant 0 : i32
    %2 = arith.cmpi ne, %1, %c0_i32_0 : i32
    scf.if %2 {
      %c0_20 = arith.constant 0 : index
      %c0_21 = arith.constant 0 : index
      %50 = vector.load %arg3[%c0_20, %c0_21] : memref<1x32xf32, #tpu.memory_space<vmem>>, vector<1x32xf32>
      %c0_22 = arith.constant 0 : index
      %c0_23 = arith.constant 0 : index
      %51 = vector.load %arg9[%c0_22, %c0_23] : memref<1x32xf32, #tpu.memory_space<vmem>>, vector<1x32xf32>
      tpu.vector_store %arg9[%c0_22, %c0_23], %50 {strides = array<i32>} : memref<1x32xf32, #tpu.memory_space<vmem>>, vector<1x32xf32>,
    } else {
    }
    %3 = arith.index_cast %arg0 : i32 to index
    %4 = memref.load %arg1[%3] : memref<1xi32, #tpu.memory_space<smem>>
    %5 = arith.index_cast %4 : i32 to index
    %c0 = arith.constant 0 : index
    %6 = vector.load %arg2[%5, %c0] : memref<20x32xf32, #tpu.memory_space<vmem>>, vector<1x32xf32>
    %c0_1 = arith.constant 0 : index
    %c0_2 = arith.constant 0 : index
    %7 = vector.load %arg9[%c0_1, %c0_2] : memref<1x32xf32, #tpu.memory_space<vmem>>, vector<1x32xf32>
    %8 = tpu.concatenate %6, %7 in 0 : vector<1x32xf32>, vector<1x32xf32> -> vector<2x32xf32>
    %c0_3 = arith.constant 0 : index
    %c0_4 = arith.constant 0 : index
    %9 = vector.load %arg4[%c0_3, %c0_4] : memref<32x192xf32, #tpu.memory_space<vmem>>, vector<32x192xf32>
    %cst = arith.constant dense<0.000000e+00> : vector<2x192xf32>
    %10 = tpu.matmul %8, %9, %cst {dimension_numbers = #tpu.dot_dimension_numbers<[1], [0], [0], [1], [0, 0, 1, 1], [], []>} : vector<2x32xf32>, vector<32x192xf32>, vector<2x192xf32> -> vector<2x192xf32>
    %c0_5 = arith.constant 0 : index
    %c0_6 = arith.constant 0 : index
    %11 = vector.load %arg5[%c0_5, %c0_6] : memref<1x192xf32, #tpu.memory_space<vmem>>, vector<1x192xf32>
    %12 = vector.broadcast %11 : vector<1x192xf32> to vector<2x192xf32>
    %13 = arith.addf %10, %12 : vector<2x192xf32>
    %14 = vector.extract_strided_slice %13 {offsets = [0, 0], sizes = [1, 96], strides = [1, 1]} : vector<2x192xf32> to vector<1x96xf32>
    %15 = vector.extract_strided_slice %13 {offsets = [1, 96], sizes = [1, 96], strides = [1, 1]} : vector<2x192xf32> to vector<1x96xf32>
    %16 = vector.extract_strided_slice %14 {offsets = [0, 0], sizes = [1, 32], strides = [1, 1]} : vector<1x96xf32> to vector<1x32xf32>
    %17 = vector.extract_strided_slice %15 {offsets = [0, 0], sizes = [1, 32], strides = [1, 1]} : vector<1x96xf32> to vector<1x32xf32>
    %18 = arith.addf %16, %17 : vector<1x32xf32>
    %19 = arith.negf %18 : vector<1x32xf32>
    %20 = math.exp %19 : vector<1x32xf32>
    %cst_7 = arith.constant 1.000000e+00 : f32
    %21 = vector.broadcast %cst_7 : f32 to vector<1x32xf32>
    %22 = arith.addf %21, %20 : vector<1x32xf32>
    %23 = arith.divf %21, %22 : vector<1x32xf32>
    %24 = vector.extract_strided_slice %14 {offsets = [0, 32], sizes = [1, 32], strides = [1, 1]} : vector<1x96xf32> to vector<1x32xf32>
    %25 = vector.extract_strided_slice %15 {offsets = [0, 32], sizes = [1, 32], strides = [1, 1]} : vector<1x96xf32> to vector<1x32xf32>
    %26 = arith.addf %24, %25 : vector<1x32xf32>
    %27 = arith.negf %26 : vector<1x32xf32>
    %28 = math.exp %27 : vector<1x32xf32>
    %cst_8 = arith.constant 1.000000e+00 : f32
    %29 = vector.broadcast %cst_8 : f32 to vector<1x32xf32>
    %30 = arith.addf %29, %28 : vector<1x32xf32>
    %31 = arith.divf %29, %30 : vector<1x32xf32>
    %32 = vector.extract_strided_slice %14 {offsets = [0, 64], sizes = [1, 32], strides = [1, 1]} : vector<1x96xf32> to vector<1x32xf32>
    %33 = vector.extract_strided_slice %15 {offsets = [0, 64], sizes = [1, 32], strides = [1, 1]} : vector<1x96xf32> to vector<1x32xf32>
    %34 = arith.mulf %23, %33 : vector<1x32xf32>
    %35 = arith.addf %32, %34 : vector<1x32xf32>
    %36 = math.tanh %35 : vector<1x32xf32>
    %cst_9 = arith.constant 1.000000e+00 : f32
    %37 = vector.broadcast %cst_9 : f32 to vector<1x32xf32>
    %38 = arith.subf %37, %31 : vector<1x32xf32>
    %39 = arith.mulf %38, %36 : vector<1x32xf32>
    %40 = arith.mulf %31, %7 : vector<1x32xf32>
    %41 = arith.addf %39, %40 : vector<1x32xf32>
    %c0_10 = arith.constant 0 : index
    %c0_11 = arith.constant 0 : index
    %42 = vector.load %arg9[%c0_10, %c0_11] : memref<1x32xf32, #tpu.memory_space<vmem>>, vector<1x32xf32>
    tpu.vector_store %arg9[%c0_10, %c0_11], %41 {strides = array<i32>} : memref<1x32xf32, #tpu.memory_space<vmem>>, vector<1x32xf32>,
    %c0_12 = arith.constant 0 : index
    %c0_13 = arith.constant 0 : index
    %43 = vector.load %arg6[%c0_12, %c0_13] : memref<32x32xf32, #tpu.memory_space<vmem>>, vector<32x32xf32>
    %cst_14 = arith.constant dense<0.000000e+00> : vector<1x32xf32>
    %44 = tpu.matmul %41, %43, %cst_14 {dimension_numbers = #tpu.dot_dimension_numbers<[1], [0], [0], [1], [0, 0, 1, 1], [], []>} : vector<1x32xf32>, vector<32x32xf32>, vector<1x32xf32> -> vector<1x32xf32>
    %c0_15 = arith.constant 0 : index
    %c0_16 = arith.constant 0 : index
    %45 = vector.load %arg7[%c0_15, %c0_16] : memref<1x32xf32, #tpu.memory_space<vmem>>, vector<1x32xf32>
    %46 = arith.addf %44, %45 : vector<1x32xf32>
    %47 = tpu.concatenate %41, %46 in 1 : vector<1x32xf32>, vector<1x32xf32> -> vector<1x64xf32>
    %48 = vector.shape_cast %47 : vector<1x64xf32> to vector<1x1x64xf32>
    %c0_17 = arith.constant 0 : index
    %c0_18 = arith.constant 0 : index
    %c0_19 = arith.constant 0 : index
    %49 = vector.load %arg8[%c0_17, %c0_18, %c0_19] : memref<1x1x64xf32, #tpu.memory_space<vmem>>, vector<1x1x64xf32>
    tpu.vector_store %arg8[%c0_17, %c0_18, %c0_19], %48 {strides = array<i32>} : memref<1x1x64xf32, #tpu.memory_space<vmem>>, vector<1x1x64xf32>,
    return
  }
  func.func @transform_0(%arg0: i32, %arg1: memref<1xi32, #tpu.memory_space<smem>>) -> (i32, i32) {
    %c0_i32 = arith.constant 0 : i32
    %c0_i32_0 = arith.constant 0 : i32
    %c0_i32_1 = arith.constant 0 : i32
    return %c0_i32, %c0_i32_0 : i32, i32
  }
  func.func @transform_1(%arg0: i32, %arg1: memref<1xi32, #tpu.memory_space<smem>>) -> (i32, i32) {
    %c0_i32 = arith.constant 0 : i32
    %c0_i32_0 = arith.constant 0 : i32
    %c0_i32_1 = arith.constant 0 : i32
    return %c0_i32, %c0_i32_0 : i32, i32
  }
  func.func @transform_2(%arg0: i32, %arg1: memref<1xi32, #tpu.memory_space<smem>>) -> (i32, i32) {
    %c0_i32 = arith.constant 0 : i32
    %c0_i32_0 = arith.constant 0 : i32
    %c0_i32_1 = arith.constant 0 : i32
    return %c0_i32, %c0_i32_0 : i32, i32
  }
  func.func @transform_3(%arg0: i32, %arg1: memref<1xi32, #tpu.memory_space<smem>>) -> (i32, i32) {
    %c0_i32 = arith.constant 0 : i32
    %c0_i32_0 = arith.constant 0 : i32
    %c0_i32_1 = arith.constant 0 : i32
    return %c0_i32, %c0_i32_0 : i32, i32
  }
  func.func @transform_4(%arg0: i32, %arg1: memref<1xi32, #tpu.memory_space<smem>>) -> (i32, i32) {
    %c0_i32 = arith.constant 0 : i32
    %c0_i32_0 = arith.constant 0 : i32
    %c0_i32_1 = arith.constant 0 : i32
    return %c0_i32, %c0_i32_0 : i32, i32
  }
  func.func @transform_5(%arg0: i32, %arg1: memref<1xi32, #tpu.memory_space<smem>>) -> (i32, i32) {
    %c0_i32 = arith.constant 0 : i32
    %c0_i32_0 = arith.constant 0 : i32
    %c0_i32_1 = arith.constant 0 : i32
    return %c0_i32, %c0_i32_0 : i32, i32
  }
  func.func @transform_6(%arg0: i32, %arg1: memref<1xi32, #tpu.memory_space<smem>>) -> (i32, i32, i32) {
    %c0_i32 = arith.constant 0 : i32
    %c0_i32_0 = arith.constant 0 : i32
    %c0_i32_1 = arith.constant 0 : i32
    return %arg0, %c0_i32, %c0_i32_0 : i32, i32, i32
  }
}

</mosaic_0001>

<bundles_post_ra>
// kernel: tpu_custom_call.1
= control target key start
LH: loop header
LB: loop body
LE: loop exit
PB: predicated region body
PF: predicated region fallthrough
CT: control target
= control target key end

     0   :  { %13 = vsyncpa [#allocation6], 0  ;;  %s558_s0 = inlined_call_operand.<no memory space> [shape: s32[1], index: 0, kind: input, shape index: {}]   ;;  %s559_s1 = inlined_call_operand.hbm [shape: f32[20,32], index: 1, kind: input, shape index: {}]   ;;  %s560_s2 = inlined_call_operand.vmem [shape: f32[1,32], index: 2, kind: input, shape index: {}]   ;;  %s561_s3 = inlined_call_operand.hbm [shape: f32[32,192], index: 3, kind: input, shape index: {}]   ;;  %s562_s4 = inlined_call_operand.vmem [shape: f32[1,192], index: 4, kind: input, shape index: {}]   ;;  %s563_s5 = inlined_call_operand.hbm [shape: f32[32,32], index: 5, kind: input, shape index: {}]   ;;  %s564_s6 = inlined_call_operand.vmem [shape: f32[1,32], index: 6, kind: input, shape index: {}]   ;;  %s565_s7 = inlined_call_operand.hbm [shape: f32[1,1,64], index: 7, kind: output, shape index: {}]  }
   0x1   :  { %14 = vsyncpa [#allocation9], 0 }
   0x2   :  { %15 = vsyncpa [#allocation7], 0  ;;  %s463_s24 = smov [#allocation8]  }
   0x3   :  { %s35_s25 = sshll.u32 %s463_s24, 4  ;;  %s36_s25 = int_to_ptr.vmem [resolvable:$true] %s35_s25 }
   0x4   :  { %s385_s26 = scalar_lea.vmem %s36_s25, 1024  ;;  %p390_p1 = scmp.lt.s32.totalorder %s36_s25, %s36_s25 }
   0x5   :  { %p386_p0 = scmp.ne.s32.totalorder %s36_s25, %s385_s26  ;;  %p391_p2 = scmp.lt.s32.totalorder %s385_s26, %s385_s26 }
   0x7   :  { %p392_p3 = por %p391_p2, %p390_p1 }
   0x9   :  { %p393_p4 = pnand %p392_p3, %p386_p0 }
   0xb   :  { %396 = shalt.err (!%p393_p4)
}
   0xc   :  { %s464_s27 = smov 256   ;;  %s465_s28 = smov 16  }
   0xd   :  { %41 = dma.hbm_to_vmem [thread:$0]  %s561_s3, 1024, %s36_s25, [#allocation9], %s464_s27, %s464_s27, %s465_s28  }
   0xe   :  { %s466_s8 = smov [#allocation5]  }
   0xf   :  { %s21_s9 = sshll.u32 %s466_s8, 4  ;;  %s22_s9 = int_to_ptr.vmem [resolvable:$true] %s21_s9 }
  0x10   :  { %s405_s10 = scalar_lea.vmem %s22_s9, 384  ;;  %p410_p6 = scmp.lt.s32.totalorder %s22_s9, %s22_s9 }
  0x11   :  { %p406_p5 = scmp.ne.s32.totalorder %s22_s9, %s405_s10  ;;  %p411_p7 = scmp.lt.s32.totalorder %s405_s10, %s405_s10 }
  0x13   :  { %p412_p8 = por %p411_p7, %p410_p6 }
  0x15   :  { %p413_p9 = pnand %p412_p8, %p406_p5 }
  0x17   :  { %416 = shalt.err (!%p413_p9)
}
  0x18   :  { %s467_s11 = smov 128   ;;  %s468_s12 = smov 8  }
  0x19   :  { %27 = dma.hbm_to_vmem [thread:$0]  %s559_s1, 384, %s22_s9, [#allocation6], %s467_s11, %s467_s11, %s468_s12  }
  0x1a   :  { %s469_s15 = smov [#allocation10]  }
  0x1b   :  { %s49_s16 = sshll.u32 %s469_s15, 4  ;;  %s50_s16 = int_to_ptr.vmem [resolvable:$true] %s49_s16 }
  0x1c   :  { %s425_s3 = scalar_lea.vmem %s50_s16, 512  ;;  %p430_p11 = scmp.lt.s32.totalorder %s50_s16, %s50_s16 }
  0x1d   :  { %p426_p10 = scmp.ne.s32.totalorder %s50_s16, %s425_s3  ;;  %p431_p12 = scmp.lt.s32.totalorder %s425_s3, %s425_s3 }
  0x1f   :  { %p432_p13 = por %p431_p12, %p430_p11 }
  0x21   :  { %p433_p0 = pnand %p432_p13, %p426_p10 }
  0x23   :  { %436 = shalt.err (!%p433_p0)
}
  0x24   :  { %55 = dma.hbm_to_vmem [thread:$0]  %s563_s5, 512, %s50_s16, [#allocation9], %s467_s11, %s467_s11, %s468_s12  }
  0x25   :  { %457 = dma.done.wait [#allocation6], 384  }
  0x26   :  { %458 = vsyncadd [#allocation6], 4294966912 }
  0x27   :  { %459 = dma.done.wait [#allocation9], 1536  }
  0x28   :  { %460 = vsyncadd [#allocation9], 4294965760  ;;  %v470_v0 = vmov 0.0   ;;  %v93_v1 = vld [vmem:[#allocation8 + $0x38] sm:$0xff]  ;;  %v92_v2 = vld [vmem:[#allocation8 + $0x30] sm:$0xff]  ;;  %vm72_vm0 = vcmask 253952   ;;  %v96_v13 = vlaneseq }
  0x29   :  { %174 = vmatprep.mubr.f32.mxu0 %v470_v0  ;;  %343 = vmatprep.subr.mxu1 %v470_v0  ;;  %v91_v3 = vld [vmem:[#allocation8 + $0x28] sm:$0xff]  ;;  %v90_v4 = vld [vmem:[#allocation8 + $0x20] sm:$0xff]  ;;  %v89_v5 = vld [vmem:[#allocation8 + $0x18] sm:$0xff]  ;;  %s75_s21 = scalar_lea.vmem [#allocation5], %s558_s0  ;;  %vm84_vm1 = vcmask 1040384   ;;  %vm106_vm2 = vcmask 261120  }
  0x2a   :  { %134 = vmatprep.subr.mxu0 %v93_v1  ;;  %v71_v6 = vld [vmem:[%s560_s2] sm:$0x1]  ;;  %v88_v7 = vld [vmem:[#allocation8 + $0x10] sm:$0xff]  ;;  %v87_v8 = vld [vmem:[#allocation8 + $0x8] sm:$0xff]  ;;  %v97_v14 = vshrl.u32 %v96_v13, 7  ;;  %s471_s0 = smov 32  }
  0x2b   :  { %135 = vmatpush1.msra.mxu0 %v92_v2  ;;  %73 = vst.msk [vmem:[#allocation2] sm:$0x1] %vm72_vm0, %v71_v6  ;;  %v86_v9 = vld [vmem:[#allocation8] sm:$0xff]  ;;  %s472_s23 = smov 96   ;;  %v235_v36 = vld [vmem:[#allocation10 + $0x18] sm:$0xff]  ;;  %v234_v37 = vld [vmem:[#allocation10 + $0x10] sm:$0xff] }
  0x2c   :  { %136 = vmatprep.subr.mxu0 %v91_v3  ;;  %v76_v10 = vld [vmem:[%s75_s21] sm:$0x1]  ;;  %v98_v15 = vsub.s32 0, %v97_v14  ;;  %v102_v17 = vsub.s32 1, %v97_v14  ;;  %344 = vmatpush3.msra.mxu1 %v235_v36  ;;  %vm474_vm3 = vmmov 0   ;;  %v233_v38 = vld [vmem:[#allocation10 + $0x8] sm:$0xff] }
  0x2d   :  { %137 = vmatpush1.msra.mxu0 %v90_v4  ;;  %v94_v16 = vld [vmem:[%s562_s4] sm:$0x3]  ;;  %s473_s4 = smov 64   ;;  %351 = vmatprep.mubr.msk.f32.mxu1 %vm474_vm3, %v470_v0  ;;  %s475_s26 = smov [#allocation11]   ;;  %vm314_vm4 = vcmask 516096  }
  0x2e   :  { %138 = vmatprep.subr.mxu0 %v89_v5  ;;  %v99_v18 = vrot.slane %v94_v16, %v98_v15  ;;  %v103_v19 = vrot.slane %v94_v16, %v102_v17  ;;  %345 = vmatprep.subr.mxu1 %v470_v0  ;;  %v232_v39 = vld [vmem:[#allocation10] sm:$0xff]  ;;  %s322_s27 = sshll.u32 %s475_s26, 4  ;;  %s323_s27 = int_to_ptr.vmem [resolvable:$true] %s322_s27 }
  0x2f   :  { %139 = vmatpush1.msra.mxu0 %v88_v7  ;;  %346 = vmatpush3.msra.mxu1 %v234_v37  ;;  %v236_v54 = vld [vmem:[%s564_s6] sm:$0x1]  ;;  %s437_s28 = scalar_lea.vmem %s323_s27, 16  ;;  %s441_s29 = scalar_lea.vmem %s323_s27, 32 }
  0x30   :  { %140 = vmatprep.subr.mxu0 %v87_v8  ;;  %347 = vmatprep.subr.mxu1 %v470_v0  ;;  %p438_p1 = scmp.ne.s32.totalorder %s323_s27, %s437_s28  ;;  %p442_p2 = scmp.lt.s32.totalorder %s323_s27, %s323_s27 }
  0x31   :  { %141 = vmatpush1.msra.mxu0 %v86_v9  ;;  %348 = vmatpush3.msra.mxu1 %v233_v38  ;;  %p443_p3 = scmp.lt.s32.totalorder %s441_s29, %s437_s28 }
  0x32   :  { %v333_v11 = vld [vmem:[#allocation2] ss:$0 sm:$0xff]  ;;  %349 = vmatprep.subr.mxu1 %v470_v0 }
  0x33   :  { %v85_v12 = vsel %vm84_vm1, %v76_v10, %v333_v11  ;;  %350 = vmatpush3.msra.mxu1 %v232_v39  ;;  %p444_p4 = por %p443_p3, %p442_p2 }
  0x34   :  { %334 = vmatmul.mubr.msk.f32.vlgmr.msra.gmra.mxu0 %vm106_vm2, %v85_v12 }
  0x35   :  { %p445_p5 = pnand %p444_p4, %p438_p1 }
  0xf4   :  { %v176_v20 = vpop.f32.mrf.mxu0 }
  0xf5   :  { %v177_v21 = vadd.f32 %v176_v20, %v99_v18 }
  0xf6   :  { %v178_v22 = vpop.f32.mrf.mxu0 }
  0xf7   :  { %v179_v23 = vadd.f32 %v178_v22, %v103_v19  ;;  %v182_v24 = vrot.slane %v177_v21, 1 }
  0xf9   :  { %183 = vrot.lane.b32.xlu0 %v182_v24, %s471_s0  ;;  %v194_v25 = vrot.slane %v179_v23, 1 }
  0xfd   :  { %205 = vrot.lane.b32.xlu0 %v194_v25, %s472_s23 }
 0x16b   :  { %v184_v26 = vpop.permute.xlu0 %183 }
 0x16c   :  { %v186_v27 = vadd.f32 %v184_v26, %v177_v21 }
 0x16e   :  { %v335_v28 = vmul.f32 -1.442695, %v186_v27 }
 0x16f   :  { %v206_v32 = vpop.permute.xlu0 %205 }
 0x170   :  { %367 = vpow2.f32 %v335_v28 }
 0x17d   :  { %v368_v29 = vpop.eup %367 }
 0x17e   :  { %v190_v30 = vadd.f32 1.0, %v368_v29 }
 0x180   :  { %369 = vrcp.f32 %v190_v30 }
 0x18d   :  { %v370_v31 = vpop.eup %369 }
 0x18e   :  { %v208_v33 = vmul.f32 %v370_v31, %v206_v32 }
 0x190   :  { %210 = vrot.lane.b32.xlu1 %v208_v33, %s473_s4 }
 0x194   :  { %195 = vrot.lane.b32.xlu1 %v194_v25, %s471_s0 }
 0x198   :  { %221 = vrot.lane.b32.xlu1 %v333_v11, %s471_s0 }
 0x202   :  { %v211_v34 = vpop.permute.xlu1 %210 }
 0x203   :  { %v213_v35 = vadd.f32 %v211_v34, %v177_v21 }
 0x205   :  { %371 = vtanh.f32 %v213_v35 }
 0x206   :  { %v196_v41 = vpop.permute.xlu1 %195 }
 0x207   :  { %v198_v42 = vadd.f32 %v196_v41, %v177_v21 }
 0x209   :  { %v336_v43 = vmul.f32 -1.442695, %v198_v42 }
 0x20a   :  { %v222_v47 = vpop.permute.xlu1 %221 }
 0x20b   :  { %373 = vpow2.f32 %v336_v43 }
 0x212   :  { %v372_v40 = vpop.eup %371 }
 0x213   :  { %217 = vrot.lane.b32.xlu0 %v372_v40, %s472_s23 }
 0x218   :  { %v374_v44 = vpop.eup %373 }
 0x219   :  { %v202_v45 = vadd.f32 1.0, %v374_v44 }
 0x21b   :  { %375 = vrcp.f32 %v202_v45 }
 0x228   :  { %v376_v46 = vpop.eup %375 }
 0x229   :  { %v215_v48 = vsub.f32 1.0, %v376_v46  ;;  %v224_v50 = vmul.f32 %v376_v46, %v222_v47 }
 0x285   :  { %v218_v49 = vpop.permute.xlu0 %217 }
 0x286   :  { %v220_v51 = vmul.f32 %v218_v49, %v215_v48 }
 0x288   :  { %v225_v52 = vadd.f32 %v224_v50, %v220_v51 }
 0x28a   :  { %227 = vrot.lane.b32.xlu0 %v225_v52, %s472_s23 }
 0x2fc   :  { %v228_v53 = vpop.permute.xlu0 %227 }
 0x2fd   :  { %231 = vst.msk [vmem:[#allocation2] sm:$0x1] %vm72_vm0, %v228_v53  ;;  %352 = vmatmul.mubr.msk.f32.vlgmr.msra.gmra.mxu1 %vm106_vm2, %v228_v53 }
 0x3bd   :  { %v305_v55 = vpop.f32.mrf.mxu1 }
 0x3be   :  { %v306_v56 = vadd.f32 %v305_v55, %v236_v54 }
 0x3bf   :  { %v353_v57 = vpop.f32.mrf.mxu1 }
 0x3c0   :  { %310 = vrot.lane.b32.xlu1 %v306_v56, %s471_s0 }
 0x432   :  { %v311_v58 = vpop.permute.xlu1 %310 }
 0x433   :  { %v313_v59 = vsel %vm106_vm2, %v228_v53, %v311_v58 }
 0x434   :  { %315 = vst.msk [vmem:[#allocation11] sm:$0x1] %vm314_vm4, %v313_v59 }
 0x435   :  { %448 = shalt.err (!%p445_p5)
}
 0x436   :  { %325 = dma.vmem_to_hbm [thread:$0]  %s323_s27, 16, %s565_s7, [#allocation7]  }
 0x437   :  { %461 = dma.done.wait [#allocation7], 16  }
 0x438   :  { %462 = vsyncadd [#allocation7], 4294967280 }
 0x439   :  { %329 = vsyncpa [#allocation6], 1 }
 0x43a   :  { %330 = vsyncpa [#allocation9], 1 }
 0x43b   :  { %331 = vsyncpa [#allocation7], 1 }

</bundles_post_ra>
